<compile_context>
chip_gen: v5e
topology: v5e:2x2
jax: 0.10.0
libtpu: 0.0.40
codegen_flags: <defaults>
</compile_context>

<pallas_src>
import functools

import jax
import jax.numpy as jnp
from jax.experimental import pallas as pl
from jax.experimental.pallas import tpu as pltpu

GAMMA = 0.5  # module default


def _focal_loss_kernel(x_ref, t_ref, out_ref, acc_ref, *, n_rows, tile_n, gamma):
    pid = pl.program_id(0)

    @pl.when(pid == 0)
    def _init():
        acc_ref[...] = jnp.zeros_like(acc_ref)

    x = x_ref[...].astype(jnp.float32)            # (tile_n, C) logits (upcast in VMEM)
    t = t_ref[...]                                # (tile_n, 1) int32 targets

    # Numerically stable row-wise log-sum-exp (the only full-tile transcendental).
    m = jnp.max(x, axis=-1, keepdims=True)        # (tile_n, 1)
    shifted = x - m                               # (tile_n, C), <= 0
    lse = jnp.log(jnp.sum(jnp.exp(shifted), axis=-1, keepdims=True))  # (tile_n, 1)

    # Gather the target-class shifted logit with a one-hot lane-iota mask.
    col = jax.lax.broadcasted_iota(jnp.int32, x.shape, 1)             # (tile_n, C)
    shifted_t = jnp.sum(jnp.where(col == t, shifted, 0.0),
                        axis=-1, keepdims=True)                        # (tile_n, 1)

    # Per-row focal term (only for the target class): sqrt(1-p_t) * log(p_t).
    log_p_t = shifted_t - lse                     # (tile_n, 1), <= 0
    p_t = jnp.exp(log_p_t)                        # (tile_n, 1), <= 1
    one_minus_p = jnp.maximum(1.0 - p_t, 0.0)     # per-row clamp: guards approx-exp > 1
    if gamma == 0.5:
        mod = jnp.sqrt(one_minus_p)
    elif gamma == 1.0:
        mod = one_minus_p
    else:
        mod = one_minus_p ** gamma
    focal_t = mod * log_p_t                       # (tile_n, 1)

    # Mask rows beyond N (ragged last tile): where() also shields any garbage
    # (NaN/Inf) read from the padded part of the last block.
    row = pid * tile_n + jax.lax.broadcasted_iota(jnp.int32, (tile_n, 1), 0)
    focal_t = jnp.where(row < n_rows, focal_t, 0.0)

    acc_ref[...] += jnp.sum(focal_t, keepdims=True)   # (1, 1) partial sum

    @pl.when(pid == pl.num_programs(0) - 1)
    def _finalize():
        # reduction='mean', weight=None: loss = -sum(focal_t) / N  (multiply by 1/N).
        out_ref[...] = -acc_ref[...] * jnp.float32(1.0 / n_rows)


def _pick_tile_n(n, c, itemsize, vmem_budget_bytes=8 * 1024 * 1024):
    """Pick a row-tile so the double-buffered logits block stays well inside VMEM
    (conservative for v7x's 64 MiB / v5e's 16 MiB default scoped limit)."""
    if n <= 8:
        return n  # full-dim block is always legal
    rows = max(8, vmem_budget_bytes // (2 * c * max(itemsize, 1)))
    rows = min(rows, 1024, n)
    rows = (rows // 8) * 8  # (8, 128) block constraint on the sublane axis
    return max(rows, 8)


def focal_loss(input_tensor, target_tensor, gamma=GAMMA, tile_n=None):
    """input_tensor: (N, C) float logits (any float dtype, kept on the wire);
    target_tensor: (N,) int class ids.  Returns scalar mean focal loss."""
    n, c = input_tensor.shape
    t = target_tensor.astype(jnp.int32).reshape(n, 1)
    if tile_n is None:
        tile_n = _pick_tile_n(n, c, jnp.dtype(input_tensor.dtype).itemsize)

    grid = (pl.cdiv(n, tile_n),)
    kernel = functools.partial(
        _focal_loss_kernel, n_rows=n, tile_n=tile_n, gamma=float(gamma))

    out = pl.pallas_call(
        kernel,
        out_shape=jax.ShapeDtypeStruct((1, 1), jnp.float32),
        grid=grid,
        in_specs=[
            pl.BlockSpec((tile_n, c), lambda i: (i, 0)),   # logits row-tile
            pl.BlockSpec((tile_n, 1), lambda i: (i, 0)),   # targets row-tile
        ],
        out_specs=pl.BlockSpec((1, 1), lambda i: (0, 0)),  # resident scalar output
        scratch_shapes=[pltpu.VMEM((1, 1), jnp.float32)],  # running sum accumulator
        compiler_params=pltpu.CompilerParams(
            dimension_semantics=("arbitrary",)),           # reduction axis
    )(input_tensor, t)
    return out[0, 0]


def _reference_focal_loss(x, t, gamma=GAMMA):
    """Pure-JAX reference mirroring the PyTorch module."""
    log_prob = jax.nn.log_softmax(x.astype(jnp.float32), axis=-1)
    prob = jnp.exp(log_prob)
    focal = (1.0 - prob) ** gamma * log_prob
    picked = jnp.take_along_axis(focal, t[:, None], axis=-1)[:, 0]
    return -jnp.mean(picked)


if __name__ == "__main__":
    key = jax.random.PRNGKey(0)
    kx, kt = jax.random.split(key)

    N, C = 40, 32  # small shapes: 40 samples, 32 classes
    x = jax.random.normal(kx, (N, C), dtype=jnp.float32)
    t = jax.random.randint(kt, (N,), 0, C, dtype=jnp.int32)
    ref = _reference_focal_loss(x, t)

    # 1) explicit small row-tile -> multi-step grid with a ragged (masked) last tile
    loss_tiled = jax.block_until_ready(focal_loss(x, t, tile_n=16))
    assert jnp.allclose(loss_tiled, ref, atol=1e-5, rtol=1e-5), (loss_tiled, ref)

    # 2) auto tile size (single-block path)
    loss_auto = jax.block_until_ready(focal_loss(x, t))
    assert jnp.allclose(loss_auto, ref, atol=1e-5, rtol=1e-5), (loss_auto, ref)

    # 3) bf16 logits stay bf16 on the HBM wire; upcast happens in-kernel
    x_bf16 = x.astype(jnp.bfloat16)
    ref_bf16 = _reference_focal_loss(x_bf16, t)
    loss_bf16 = jax.block_until_ready(focal_loss(x_bf16, t, tile_n=16))
    assert jnp.allclose(loss_bf16, ref_bf16, atol=1e-4, rtol=1e-4), (loss_bf16, ref_bf16)

    print("KERNEL_OK")
</pallas_src>

<mosaic_0001>
module attributes {stable_mosaic.version = 11 : i64} {
  func.func @_focal_loss_kernel(%arg0: i32, %arg1: memref<16x32xf32, #tpu.memory_space<vmem>>, %arg2: memref<16x1xi32, #tpu.memory_space<vmem>>, %arg3: memref<1x1xf32, #tpu.memory_space<vmem>>, %arg4: memref<1x1xf32, #tpu.memory_space<vmem>>) attributes {dimension_semantics = [#tpu.dimension_semantics<arbitrary>], iteration_bounds = array<i64: 3>, scalar_prefetch = 0 : i64, scratch_operands = 1 : i64, tpu.core_type = #tpu.core_type<tc>, window_params = [{transform_indices = @transform_0, window_bounds = array<i64: 16, 32>}, {transform_indices = @transform_1, window_bounds = array<i64: 16, 1>}, {pipeline_mode = #tpu.pipeline_mode<synchronous>, transform_indices = @transform_2, window_bounds = array<i64: 1, 1>}]} {
    %c0_i32 = arith.constant 0 : i32
    %0 = arith.cmpi eq, %arg0, %c0_i32 : i32
    %1 = arith.extui %0 : i1 to i32
    %c0_i32_0 = arith.constant 0 : i32
    %2 = arith.cmpi ne, %1, %c0_i32_0 : i32
    scf.if %2 {
      %cst_16 = arith.constant 0.000000e+00 : f32
      %47 = vector.broadcast %cst_16 : f32 to vector<1x1xf32>
      %c0_17 = arith.constant 0 : index
      %c0_18 = arith.constant 0 : index
      %48 = vector.load %arg4[%c0_17, %c0_18] : memref<1x1xf32, #tpu.memory_space<vmem>>, vector<1x1xf32>
      tpu.vector_store %arg4[%c0_17, %c0_18], %47 {strides = array<i32>} : memref<1x1xf32, #tpu.memory_space<vmem>>, vector<1x1xf32>,
    } else {
    }
    %c0 = arith.constant 0 : index
    %c0_1 = arith.constant 0 : index
    %3 = vector.load %arg1[%c0, %c0_1] : memref<16x32xf32, #tpu.memory_space<vmem>>, vector<16x32xf32>
    %c0_2 = arith.constant 0 : index
    %c0_3 = arith.constant 0 : index
    %4 = vector.load %arg2[%c0_2, %c0_3] : memref<16x1xi32, #tpu.memory_space<vmem>>, vector<16x1xi32>
    %cst = arith.constant dense<0xFF800000> : vector<16xf32>
    %5 = vector.multi_reduction <maximumf>, %3, %cst [1] : vector<16x32xf32> to vector<16xf32>
    %6 = vector.shape_cast %5 : vector<16xf32> to vector<16x1xf32>
    %7 = vector.broadcast %6 : vector<16x1xf32> to vector<16x32xf32>
    %8 = arith.subf %3, %7 : vector<16x32xf32>
    %9 = math.exp %8 : vector<16x32xf32>
    %cst_4 = arith.constant dense<0.000000e+00> : vector<16xf32>
    %10 = vector.multi_reduction <add>, %9, %cst_4 [1] : vector<16x32xf32> to vector<16xf32>
    %11 = vector.shape_cast %10 : vector<16xf32> to vector<16x1xf32>
    %12 = math.log %11 : vector<16x1xf32>
    %13 = tpu.iota {dimensions = array<i32: 1>} : vector<16x32xi32>
    %14 = vector.broadcast %4 : vector<16x1xi32> to vector<16x32xi32>
    %15 = arith.cmpi eq, %13, %14 : vector<16x32xi32>
    %cst_5 = arith.constant 0.000000e+00 : f32
    %16 = vector.broadcast %cst_5 : f32 to vector<16x32xf32>
    %17 = arith.select %15, %8, %16 : vector<16x32xi1>, vector<16x32xf32>
    %cst_6 = arith.constant dense<0.000000e+00> : vector<16xf32>
    %18 = vector.multi_reduction <add>, %17, %cst_6 [1] : vector<16x32xf32> to vector<16xf32>
    %19 = vector.shape_cast %18 : vector<16xf32> to vector<16x1xf32>
    %20 = arith.subf %19, %12 : vector<16x1xf32>
    %21 = math.exp %20 : vector<16x1xf32>
    %cst_7 = arith.constant 1.000000e+00 : f32
    %22 = vector.broadcast %cst_7 : f32 to vector<16x1xf32>
    %23 = arith.subf %22, %21 : vector<16x1xf32>
    %cst_8 = arith.constant 0.000000e+00 : f32
    %24 = vector.broadcast %cst_8 : f32 to vector<16x1xf32>
    %25 = arith.maximumf %23, %24 : vector<16x1xf32>
    %26 = math.sqrt %25 : vector<16x1xf32>
    %27 = arith.mulf %26, %20 : vector<16x1xf32>
    %c16_i32 = arith.constant 16 : i32
    %28 = arith.muli %arg0, %c16_i32 : i32
    %29 = tpu.iota {dimensions = array<i32: 0>} : vector<16x1xi32>
    %30 = vector.broadcast %28 : i32 to vector<16x1xi32>
    %31 = arith.addi %30, %29 : vector<16x1xi32>
    %c40_i32 = arith.constant 40 : i32
    %32 = vector.broadcast %c40_i32 : i32 to vector<16x1xi32>
    %33 = arith.cmpi slt, %31, %32 : vector<16x1xi32>
    %cst_9 = arith.constant 0.000000e+00 : f32
    %34 = vector.broadcast %cst_9 : f32 to vector<16x1xf32>
    %35 = arith.select %33, %27, %34 : vector<16x1xi1>, vector<16x1xf32>
    %c0_10 = arith.constant 0 : index
    %c0_11 = arith.constant 0 : index
    %36 = vector.load %arg4[%c0_10, %c0_11] : memref<1x1xf32, #tpu.memory_space<vmem>>, vector<1x1xf32>
    %37 = vector.shape_cast %35 : vector<16x1xf32> to vector<1x16x1xf32>
    %cst_12 = arith.constant dense<0.000000e+00> : vector<1xf32>
    %38 = vector.multi_reduction <add>, %37, %cst_12 [1, 2] : vector<1x16x1xf32> to vector<1xf32>
    %39 = vector.shape_cast %38 : vector<1xf32> to vector<1x1x1xf32>
    %40 = vector.extract %39[0, 0, 0] : f32 from vector<1x1x1xf32>
    %41 = vector.broadcast %40 : f32 to vector<1x1xf32>
    %42 = arith.addf %36, %41 : vector<1x1xf32>
    %c0_13 = arith.constant 0 : index
    %c0_14 = arith.constant 0 : index
    %43 = vector.load %arg4[%c0_13, %c0_14] : memref<1x1xf32, #tpu.memory_space<vmem>>, vector<1x1xf32>
    tpu.vector_store %arg4[%c0_13, %c0_14], %42 {strides = array<i32>} : memref<1x1xf32, #tpu.memory_space<vmem>>, vector<1x1xf32>,
    %c2_i32 = arith.constant 2 : i32
    %44 = arith.cmpi eq, %arg0, %c2_i32 : i32
    %45 = arith.extui %44 : i1 to i32
    %c0_i32_15 = arith.constant 0 : i32
    %46 = arith.cmpi ne, %45, %c0_i32_15 : i32
    scf.if %46 {
      %c0_16 = arith.constant 0 : index
      %c0_17 = arith.constant 0 : index
      %47 = vector.load %arg4[%c0_16, %c0_17] : memref<1x1xf32, #tpu.memory_space<vmem>>, vector<1x1xf32>
      %cst_18 = arith.constant 0.000000e+00 : f32
      %48 = vector.broadcast %cst_18 : f32 to vector<1x1xf32>
      %49 = arith.subf %48, %47 : vector<1x1xf32>
      %cst_19 = arith.constant 2.500000e-02 : f32
      %50 = vector.broadcast %cst_19 : f32 to vector<1x1xf32>
      %51 = arith.mulf %49, %50 : vector<1x1xf32>
      %c0_20 = arith.constant 0 : index
      %c0_21 = arith.constant 0 : index
      %52 = vector.load %arg3[%c0_20, %c0_21] : memref<1x1xf32, #tpu.memory_space<vmem>>, vector<1x1xf32>
      tpu.vector_store %arg3[%c0_20, %c0_21], %51 {strides = array<i32>} : memref<1x1xf32, #tpu.memory_space<vmem>>, vector<1x1xf32>,
    } else {
    }
    return
  }
  func.func @transform_0(%arg0: i32) -> (i32, i32) {
    %c0_i32 = arith.constant 0 : i32
    %c0_i32_0 = arith.constant 0 : i32
    return %arg0, %c0_i32 : i32, i32
  }
  func.func @transform_1(%arg0: i32) -> (i32, i32) {
    %c0_i32 = arith.constant 0 : i32
    %c0_i32_0 = arith.constant 0 : i32
    return %arg0, %c0_i32 : i32, i32
  }
  func.func @transform_2(%arg0: i32) -> (i32, i32) {
    %c0_i32 = arith.constant 0 : i32
    %c0_i32_0 = arith.constant 0 : i32
    %c0_i32_1 = arith.constant 0 : i32
    return %c0_i32, %c0_i32_0 : i32, i32
  }
}

</mosaic_0001>

<bundles_post_ra>
// kernel: tpu_custom_call.1
= control target key start
LH: loop header
LB: loop body
LE: loop exit
PB: predicated region body
PF: predicated region fallthrough
CT: control target
= control target key end

     0   :  { %7 = vsyncpa [#allocation4], 0  ;;  %s488_s9 = smov 0   ;;  %s521_s0 = inlined_call_operand.vmem [shape: f32[40,32], index: 0, kind: input, shape index: {}]   ;;  %s522_s1 = inlined_call_operand.vmem [shape: s32[40,1], index: 1, kind: input, shape index: {}]   ;;  %s523_s2 = inlined_call_operand.hbm [shape: f32[1,1], index: 2, kind: output, shape index: {}]  }
   0x1 LB: > { %s494_s10 = sadd.s32 4294967295, %s468_s9   ;;  %p381_p0 = scmp.ge.s32.totalorder %s468_s9, 1  ;;  %s468_s9 = sphi %s488_s9, %s13_s9  }
   0x2   : > { %p136_p1 = scmp.lt.s32.totalorder %s468_s9, 4 }
   0x4   : > { %p137_p2 = pnand %p381_p0, %p136_p1 }
   0x5   : > { %s382_s11 = sshll.u32 (!%p137_p2), %s494_s10, 1  ;;  %p386_p4 = scmp.ne.s32.totalorder (!%p137_p2), %s494_s10, 0 }
   0x6   : > { %140 = sbr.rel (%p137_p2) target bundleno = 522 (0x20a), region = 28  ;;  %p171_p3 = scmp.lt.s32.totalorder (!%p137_p2), %s382_s11, 4 }
   0xb   : > { %s525_s11 = smov (!%p171_p3, %s382_s11), 4  ;;  %197 = sbr.rel (%p386_p4) target bundleno = 18 (0x12), region = 32 }
   0xc   : > { %s383_s12 = sshll.u32 %s525_s11, 3 }
   0xd   : > { %s174_s15 = scalar_lea.vmem %s521_s0, %s383_s12  ;;  %s188_s18 = scalar_lea.vmem %s522_s1, %s383_s12 }
  0x10   : > { %vm198_vm0 = vcmask 0   ;;  %v470_v0 = vmov 0.0  }
  0x11   : > { %199 = vst.msk [vmem:[#allocation2] sm:$0x1] %vm198_vm0, %v470_v0 }
  0x12 PF: > { %v200_v1 = vld [vmem:[%s174_s15] sm:$0xff]  ;;  %vm204_vm1 = vcmask 261120   ;;  %v471_v4 = vmov 0   ;;  %v201_v5 = vld [vmem:[%s174_s15 + $0x8] sm:$0xff]  ;;  %v227_v8 = vlaneseq  ;;  %s387_s19 = sshll.u32 %s494_s10, 4  ;;  %vm293_vm10 = vcmask 7168  }
  0x13   : > { %v202_v2 = vld [vmem:[%s188_s18] sm:$0xff]  ;;  %v205_v3 = vsel %vm204_vm1, %v200_v1, -inf  ;;  %412 = vset.pattern.permute.xlu1 %v471_v4  ;;  %413 = vset.pattern.permute.xlu0 %v471_v4  ;;  %v208_v6 = vsel %vm204_vm1, %v201_v5, -inf  ;;  %v203_v7 = vld [vmem:[%s188_s18 + $0x8] sm:$0xff]  ;;  %v285_v57 = vstv %s387_s19  ;;  %vm308_vm11 = vcmask 0   ;;  %p388_p5 = scmp.ne.s32.totalorder %s494_s10, 2 }
  0x14   : > { %206 = vmax.xlane.f32.xlu0 %v205_v3  ;;  %230 = vperm.xlu1 %412, %v202_v2   ;;  %v228_v9 = vand.u32 127, %v227_v8  ;;  %v283_v54 = vshrl.u32 %v227_v8, 7 }
  0x16   : > { %v284_v59 = vadd.s32 8, %v283_v54  ;;  %v286_v62 = vadd.s32 %v285_v57, %v283_v54 }
  0x18   : > { %v287_v0 = vadd.s32 %v285_v57, %v284_v59  ;;  %vm288_vm7 = vcmp.lt.s32.totalorder %v286_v62, 40 }
  0x1a   : > { %vm289_vm9 = vcmp.lt.s32.totalorder %v287_v0, 40 }
  0x1c   : > { %209 = vmax.xlane.f32.xlu0 %v208_v6  ;;  %233 = vperm.xlu1 %412, %v203_v7  }
  0x86   : > { %v231_v10 = vpop.permute.xlu1 %230 }
  0x87   : > { %v207_v11 = vpop.xlane.xlu0 %206  ;;  %vm235_vm2 = vcmp.eq.s32.totalorder %v228_v9, %v231_v10 }
  0x88   : > { %v211_v12 = vsub.f32 %v200_v1, %v207_v11 }
  0x8a   : > { %v213_v13 = vmul.f32 1.442695, %v211_v12  ;;  %v237_v14 = vsel %vm235_vm2, %v211_v12, 0.0 }
  0x8b   : > { %v239_v15 = vsel %vm204_vm1, %v237_v14, 0.0 }
  0x8c   : > { %414 = vpow2.f32 %v213_v13  ;;  %240 = vadd.xlane.f32.xlu0 %v239_v15 }
  0x8e   : > { %v234_v16 = vpop.permute.xlu1 %233 }
  0x8f   : > { %v210_v17 = vpop.xlane.xlu0 %209  ;;  %vm236_vm3 = vcmp.eq.s32.totalorder %v228_v9, %v234_v16 }
  0x90   : > { %v212_v18 = vsub.f32 %v201_v5, %v210_v17 }
  0x92   : > { %v415_v19 = vpop.eup %414  ;;  %v215_v20 = vmul.f32 1.442695, %v212_v18  ;;  %v238_v21 = vsel %vm236_vm3, %v212_v18, 0.0 }
  0x93   : > { %v217_v22 = vsel %vm204_vm1, %v415_v19, 0.0  ;;  %v242_v23 = vsel %vm204_vm1, %v238_v21, 0.0  ;;  %v292_v19 = vld [vmem:[#allocation2] sm:$0x1] }
  0x94   : > { %416 = vpow2.f32 %v215_v20  ;;  %218 = vadd.xlane.f32.xlu2 %v217_v22  ;;  %243 = vadd.xlane.f32.xlu1 %v242_v23 }
  0x9a   : > { %v417_v24 = vpop.eup %416 }
  0x9b   : > { %v220_v25 = vsel %vm204_vm1, %v417_v24, 0.0 }
  0x9c   : > { %221 = vadd.xlane.f32.xlu2 %v220_v25 }
  0xff   : > { %v241_v30 = vpop.xlane.xlu0 %240 }
 0x107   : > { %v219_v26 = vpop.xlane.xlu2 %218  ;;  %v244_v35 = vpop.xlane.xlu1 %243 }
 0x108   : > { %418 = vlog2.f32 %v219_v26 }
 0x10e   : > { %v419_v27 = vpop.eup %418 }
 0x10f   : > { %v224_v28 = vmul.f32 0.6931472, %v419_v27  ;;  %v222_v29 = vpop.xlane.xlu2 %221 }
 0x110   : > { %420 = vlog2.f32 %v222_v29 }
 0x111   : > { %v245_v31 = vsub.f32 %v241_v30, %v224_v28 }
 0x113   : > { %v247_v32 = vmul.f32 1.442695, %v245_v31 }
 0x115   : > { %422 = vpow2.f32 %v247_v32 }
 0x116   : > { %v421_v33 = vpop.eup %420 }
 0x117   : > { %v226_v34 = vmul.f32 0.6931472, %v421_v33 }
 0x119   : > { %v246_v36 = vsub.f32 %v244_v35, %v226_v34 }
 0x11b   : > { %v423_v37 = vpop.eup %422  ;;  %v249_v38 = vmul.f32 1.442695, %v246_v36 }
 0x11c   : > { %v251_v39 = vsub.f32 1.0, %v423_v37 }
 0x11d   : > { %424 = vpow2.f32 %v249_v38 }
 0x11e   : > { %v253_v40 = vmax.f32 %v251_v39, 0.0 }
 0x120   : > { %426 = vrsqrt.f32 %v253_v40  ;;  %vm262_vm4 = vcmp.eq.f32.partialorder %v253_v40, inf  ;;  %v265_v58 = vand.u32 2147483648, %v253_v40  ;;  %vm264_vm5 = vcmp.eq.f32.partialorder %v253_v40, 0.0 }
 0x123   : > { %v425_v41 = vpop.eup %424 }
 0x124   : > { %v252_v42 = vsub.f32 1.0, %v425_v41 }
 0x126   : > { %v427_v43 = vpop.eup %426  ;;  %v254_v44 = vmax.f32 %v252_v42, 0.0 }
 0x127   : > { %v256_v45 = vmul.f32 %v427_v43, %v253_v40 }
 0x128   : > { %428 = vrsqrt.f32 %v254_v44  ;;  %vm274_vm6 = vcmp.eq.f32.partialorder %v254_v44, inf  ;;  %v277_v3 = vand.u32 2147483648, %v254_v44  ;;  %vm276_vm8 = vcmp.eq.f32.partialorder %v254_v44, 0.0 }
 0x129   : > { %v257_v46 = vmul.f32 %v427_v43, %v256_v45 }
 0x12b   : > { %v258_v47 = vmul.f32 0.5, %v257_v46 }
 0x12d   : > { %v259_v48 = vsub.f32 1.5, %v258_v47 }
 0x12e   : > { %v429_v49 = vpop.eup %428 }
 0x12f   : > { %v260_v50 = vmul.f32 %v427_v43, %v259_v48  ;;  %v268_v51 = vmul.f32 %v429_v49, %v254_v44 }
 0x131   : > { %v261_v52 = vmul.f32 %v260_v50, %v253_v40  ;;  %v269_v53 = vmul.f32 %v429_v49, %v268_v51 }
 0x133   : > { %v263_v55 = vsel %vm262_vm4, %v253_v40, %v261_v52  ;;  %v270_v56 = vmul.f32 0.5, %v269_v53 }
 0x134   : > { %v266_v61 = vsel %vm264_vm5, %v265_v58, %v263_v55 }
 0x135   : > { %v271_v60 = vsub.f32 1.5, %v270_v56  ;;  %v279_v2 = vmul.f32 %v266_v61, %v245_v31 }
 0x137   : > { %v272_v63 = vmul.f32 %v429_v49, %v271_v60  ;;  %v290_v7 = vsel %vm288_vm7, %v279_v2, 0.0 }
 0x138   : > { %v294_v9 = vsel %vm293_vm10, %v290_v7, 0.0 }
 0x139   : > { %v273_v1 = vmul.f32 %v272_v63, %v254_v44 }
 0x13b   : > { %v275_v4 = vsel %vm274_vm6, %v254_v44, %v273_v1 }
 0x13c   : > { %v278_v5 = vsel %vm276_vm8, %v277_v3, %v275_v4 }
 0x13d   : > { %v280_v6 = vmul.f32 %v278_v5, %v246_v36 }
 0x13f   : > { %v291_v8 = vsel %vm289_vm9, %v280_v6, 0.0 }
 0x140   : > { %v295_v10 = vsel %vm293_vm10, %v291_v8, 0.0 }
 0x141   : > { %v296_v11 = vadd.f32 %v295_v10, %v294_v9 }
 0x143   : > { %297 = vadd.xlane.f32.xlu2 %v296_v11 }
 0x1b6   : > { %v298_v12 = vpop.xlane.xlu2 %297 }
 0x1b7   : > { %v299_v13 = vrot.slane %v298_v12, 4 }
 0x1b9   : > { %v300_v14 = vadd.f32 %v299_v13, %v298_v12 }
 0x1bb   : > { %v301_v15 = vrot.slane %v300_v14, 2 }
 0x1bd   : > { %v302_v16 = vadd.f32 %v301_v15, %v300_v14 }
 0x1bf   : > { %v303_v17 = vrot.slane %v302_v16, 1 }
 0x1c1   : > { %v304_v18 = vadd.f32 %v303_v17, %v302_v16 }
 0x1c3   : > { %393 = vpush %v304_v18 }
 0x1f4   : > { %s394_s20 = spop %393  ;;  %313 = sbr.rel (%p388_p5) target bundleno = 517 (0x205), region = 36 }
 0x1f5   : > { %v306_v20 = vstv %s394_s20 }
 0x1f6   : > { %v307_v21 = vadd.f32 %v306_v20, %v292_v19 }
 0x1f8   : > { %309 = vst.msk [vmem:[#allocation2] sm:$0x1] %vm308_vm11, %v307_v21 }
 0x1ff   : > { %v314_v22 = vld [vmem:[#allocation2] sm:$0x1] }
 0x200   : > { %v315_v23 = vsub.f32 0.0, %v314_v22 }
 0x202   : > { %v316_v24 = vmul.f32 0.025, %v315_v23 }
 0x204   : > { %317 = vst.msk [vmem:[#allocation3] sm:$0x1] %vm308_vm11, %v316_v24 }
 0x205 PF: > { %p399_p6 = scmp.eq.s32.totalorder %s494_s10, 2  ;;  %s472_s21 = smov [#allocation3]  }
 0x206   : > { %s324_s22 = sshll.u32 %s472_s21, 4  ;;  %s326_s25 = sshll.u32 %s523_s2, 4  ;;  %s325_s22 = int_to_ptr.vmem [resolvable:$true] %s324_s22  ;;  %s327_s25 = int_to_ptr.hbm [resolvable:$true] %s326_s25 }
 0x207   : > { %396 = dma.vmem_to_hbm [thread:$0]  (%p399_p6), %s325_s22, 16, %s327_s25, [#allocation4]  }
 0x208   : > { %463 = dma.done.wait (%p399_p6), [#allocation4], 16  }
 0x209   : > { %465 = vsyncadd (%p399_p6), [#allocation4], 4294967280 }
 0x20a PF: > { %s13_s9 = sadd.s32 1, %s468_s9  }
 0x20b   : > { %p10_p7 = scmp.ge.s32.totalorder %s13_s9, 5  }
 0x20d   :  { %12 = sbr.rel (!%p10_p7) target bundleno = 1 (0x1), region = 66 }
 0x212   :  { %340 = vsyncpa [#allocation4], 1 }
 0x213   :  { %342 = vsyncpa [#allocation4 + $0x1], 1 }

</bundles_post_ra>
